<compile_context>
chip_gen: v5e
topology: v5e:2x2
jax: 0.10.0
libtpu: 0.0.40
codegen_flags: <defaults>
</compile_context>

<pallas_src>
import jax
import jax.numpy as jnp
from jax.experimental import pallas as pl
from jax.experimental.pallas import tpu as pltpu


def _adaptive_pool_kernel(x_ref, mixer_ref, ssum_ref, seven_ref, sodd_ref, o_ref):
    # x_ref:     (TR, 2*W)    f32  [even H-row | odd H-row] per output strip
    # mixer_ref: (TR, 1)      f32  per-row (per-channel) mixer scalar
    # s*_ref:    (CK, CK//2)  f32  constant 0/1 lane-pair selection matrices
    # o_ref:     (TR, Wo)     f32
    two_w = x_ref.shape[1]
    w = two_w // 2
    ck = ssum_ref.shape[0]
    cko = ssum_ref.shape[1]
    n_chunks = w // ck                       # static

    x = x_ref[...]                           # (TR, 2W)
    e = x[:, :w]                             # vertical-even rows (TR, W)
    o = x[:, w:]                             # vertical-odd rows  (TR, W)
    rsum = e + o                             # vertical pair sum
    rmax = jnp.maximum(e, o)                 # vertical pair max

    s_sum = ssum_ref[...]
    s_even = seven_ref[...]
    s_odd = sodd_ref[...]
    mix = mixer_ref[...]                     # (TR, 1)

    hi = jax.lax.Precision.HIGHEST
    # Block-diagonal selection -> process the lane dim in CK-wide chunks so MXU
    # work stays negligible next to HBM traffic even for large W.
    for t in range(n_chunks):                # static Python loop (usually 1)
        rs = rsum[:, t * ck:(t + 1) * ck]
        rm = rmax[:, t * ck:(t + 1) * ck]
        # Horizontal pair-sum, compacted from CK to CK//2 lanes (exact 0/1 selection).
        psum = jnp.dot(rs, s_sum, preferred_element_type=jnp.float32, precision=hi)
        # Horizontal pair-max = max(even-lane pick, odd-lane pick), compacted.
        pmax = jnp.maximum(
            jnp.dot(rm, s_even, preferred_element_type=jnp.float32, precision=hi),
            jnp.dot(rm, s_odd, preferred_element_type=jnp.float32, precision=hi))
        o_ref[:, t * cko:(t + 1) * cko] = (psum * 0.25 + pmax * mix).astype(o_ref.dtype)


def _lane_chunk(w):
    # Chunk the horizontal reduction so the selection matmuls stay cheap.
    for ck in (256, 128):
        if w % ck == 0:
            return ck
    return w


def _block_rows(r, w):
    # ~1 MiB per x block: double-buffered in/out streams stay well inside the
    # default scoped VMEM on v5e (16 MiB) and v6e/v7x (32 MiB).
    row_bytes = 2 * w * 4
    tr = max(8, (1 << 20) // row_bytes)
    tr = min(tr, r, 1024)
    if tr >= 8:
        tr -= tr % 8                         # sublane-aligned blocks
    return max(tr, 1)


def adaptive_pool(x, mixer):
    """x: (N, C, H, W) float32, mixer: (1, C, 1, 1) float32 -> (N, C, H//2, W//2)."""
    N, C, H, W = x.shape
    assert H % 2 == 0 and W % 2 == 0, "kernel_size=2, stride=2 pooling needs even H, W"
    Ho, Wo = H // 2, W // 2
    R = N * C * Ho

    # Free, contiguous reshape: each row packs one 2-row pooling strip.
    xr = x.reshape(R, 2 * W)

    # Tiny per-row mixer scalar vector (channel value broadcast over N and Ho).
    mixer_rows = jnp.broadcast_to(mixer.reshape(1, C, 1), (N, C, Ho)).reshape(R, 1)
    mixer_rows = mixer_rows.astype(x.dtype)

    # Constant 0/1 selection matrices: pair-sum / even-lane pick / odd-lane pick,
    # compacting CK adjacent lanes down to CK//2.
    ck = _lane_chunk(W)
    cko = ck // 2
    rows_i = jnp.arange(ck)[:, None]
    cols_j = jnp.arange(cko)[None, :]
    s_even = (rows_i == 2 * cols_j).astype(x.dtype)
    s_odd = (rows_i == 2 * cols_j + 1).astype(x.dtype)
    s_sum = s_even + s_odd

    tr = _block_rows(R, W)
    grid = (pl.cdiv(R, tr),)

    const_spec = pl.BlockSpec((ck, cko), lambda i: (0, 0))
    out = pl.pallas_call(
        _adaptive_pool_kernel,
        out_shape=jax.ShapeDtypeStruct((R, Wo), x.dtype),
        grid=grid,
        in_specs=[
            pl.BlockSpec((tr, 2 * W), lambda i: (i, 0)),   # x pooling strips
            pl.BlockSpec((tr, 1), lambda i: (i, 0)),       # mixer rows (VMEM)
            const_spec, const_spec, const_spec,            # selection matrices
        ],
        out_specs=pl.BlockSpec((tr, Wo), lambda i: (i, 0)),
        compiler_params=pltpu.CompilerParams(
            dimension_semantics=("parallel",)),
    )(xr, mixer_rows, s_sum, s_even, s_odd)

    return out.reshape(N, C, Ho, Wo)


def adaptive_pool_ref(x, mixer):
    """Pure-JAX reference matching F.avg_pool2d + F.max_pool2d * mixer."""
    N, C, H, W = x.shape
    xr = x.reshape(N, C, H // 2, 2, W // 2, 2)
    avg = xr.mean(axis=(3, 5))
    mx = xr.max(axis=(3, 5))
    return avg + mx * mixer


if __name__ == "__main__":
    N, C, H, W = 2, 4, 16, 16

    key = jax.random.PRNGKey(0)
    kx, km = jax.random.split(key)
    x = jax.random.normal(kx, (N, C, H, W), dtype=jnp.float32)
    # Deterministic synthetic parameter (matches nn.Parameter(torch.randn(1, C, 1, 1))).
    mixer = jax.random.normal(km, (1, C, 1, 1), dtype=jnp.float32)

    out = adaptive_pool(x, mixer)
    out = jax.block_until_ready(out)

    ref = adaptive_pool_ref(x, mixer)
    assert out.shape == (N, C, H // 2, W // 2), out.shape
    assert jnp.allclose(out, ref, atol=1e-5, rtol=1e-5), "mismatch vs reference"

    print("KERNEL_OK")
</pallas_src>

<mosaic_0001>
module attributes {stable_mosaic.version = 11 : i64} {
  func.func @_adaptive_pool_kernel(%arg0: i32, %arg1: memref<64x32xf32, #tpu.memory_space<vmem>>, %arg2: memref<64x1xf32, #tpu.memory_space<vmem>>, %arg3: memref<16x8xf32, #tpu.memory_space<vmem>>, %arg4: memref<16x8xf32, #tpu.memory_space<vmem>>, %arg5: memref<16x8xf32, #tpu.memory_space<vmem>>, %arg6: memref<64x8xf32, #tpu.memory_space<vmem>>) attributes {dimension_semantics = [#tpu.dimension_semantics<parallel>], iteration_bounds = array<i64: 1>, scalar_prefetch = 0 : i64, scratch_operands = 0 : i64, tpu.core_type = #tpu.core_type<tc>, window_params = [{transform_indices = @transform_0, window_bounds = array<i64: 64, 32>}, {transform_indices = @transform_1, window_bounds = array<i64: 64, 1>}, {pipeline_mode = #tpu.pipeline_mode<synchronous>, transform_indices = @transform_2, window_bounds = array<i64: 16, 8>}, {pipeline_mode = #tpu.pipeline_mode<synchronous>, transform_indices = @transform_3, window_bounds = array<i64: 16, 8>}, {pipeline_mode = #tpu.pipeline_mode<synchronous>, transform_indices = @transform_4, window_bounds = array<i64: 16, 8>}, {transform_indices = @transform_5, window_bounds = array<i64: 64, 8>}]} {
    %c0 = arith.constant 0 : index
    %c0_0 = arith.constant 0 : index
    %0 = vector.load %arg1[%c0, %c0_0] : memref<64x32xf32, #tpu.memory_space<vmem>>, vector<64x32xf32>
    %1 = vector.extract_strided_slice %0 {offsets = [0, 0], sizes = [64, 16], strides = [1, 1]} : vector<64x32xf32> to vector<64x16xf32>
    %2 = vector.extract_strided_slice %0 {offsets = [0, 16], sizes = [64, 16], strides = [1, 1]} : vector<64x32xf32> to vector<64x16xf32>
    %3 = arith.addf %1, %2 : vector<64x16xf32>
    %4 = arith.maximumf %1, %2 : vector<64x16xf32>
    %c0_1 = arith.constant 0 : index
    %c0_2 = arith.constant 0 : index
    %5 = vector.load %arg3[%c0_1, %c0_2] : memref<16x8xf32, #tpu.memory_space<vmem>>, vector<16x8xf32>
    %c0_3 = arith.constant 0 : index
    %c0_4 = arith.constant 0 : index
    %6 = vector.load %arg4[%c0_3, %c0_4] : memref<16x8xf32, #tpu.memory_space<vmem>>, vector<16x8xf32>
    %c0_5 = arith.constant 0 : index
    %c0_6 = arith.constant 0 : index
    %7 = vector.load %arg5[%c0_5, %c0_6] : memref<16x8xf32, #tpu.memory_space<vmem>>, vector<16x8xf32>
    %c0_7 = arith.constant 0 : index
    %c0_8 = arith.constant 0 : index
    %8 = vector.load %arg2[%c0_7, %c0_8] : memref<64x1xf32, #tpu.memory_space<vmem>>, vector<64x1xf32>
    %cst = arith.constant dense<0.000000e+00> : vector<64x8xf32>
    %9 = tpu.matmul %3, %5, %cst {dimension_numbers = #tpu.dot_dimension_numbers<[1], [0], [0], [1], [0, 0, 1, 1], [], []>, precision = #tpu.contract_precision<fp32>} : vector<64x16xf32>, vector<16x8xf32>, vector<64x8xf32> -> vector<64x8xf32>
    %cst_9 = arith.constant dense<0.000000e+00> : vector<64x8xf32>
    %10 = tpu.matmul %4, %6, %cst_9 {dimension_numbers = #tpu.dot_dimension_numbers<[1], [0], [0], [1], [0, 0, 1, 1], [], []>, precision = #tpu.contract_precision<fp32>} : vector<64x16xf32>, vector<16x8xf32>, vector<64x8xf32> -> vector<64x8xf32>
    %cst_10 = arith.constant dense<0.000000e+00> : vector<64x8xf32>
    %11 = tpu.matmul %4, %7, %cst_10 {dimension_numbers = #tpu.dot_dimension_numbers<[1], [0], [0], [1], [0, 0, 1, 1], [], []>, precision = #tpu.contract_precision<fp32>} : vector<64x16xf32>, vector<16x8xf32>, vector<64x8xf32> -> vector<64x8xf32>
    %12 = arith.maximumf %10, %11 : vector<64x8xf32>
    %cst_11 = arith.constant 2.500000e-01 : f32
    %13 = vector.broadcast %cst_11 : f32 to vector<64x8xf32>
    %14 = arith.mulf %9, %13 : vector<64x8xf32>
    %15 = vector.broadcast %8 : vector<64x1xf32> to vector<64x8xf32>
    %16 = arith.mulf %12, %15 : vector<64x8xf32>
    %17 = arith.addf %14, %16 : vector<64x8xf32>
    %c0_12 = arith.constant 0 : index
    %c0_13 = arith.constant 0 : index
    %18 = vector.load %arg6[%c0_12, %c0_13] : memref<64x8xf32, #tpu.memory_space<vmem>>, vector<64x8xf32>
    tpu.vector_store %arg6[%c0_12, %c0_13], %17 {strides = array<i32>} : memref<64x8xf32, #tpu.memory_space<vmem>>, vector<64x8xf32>,
    return
  }
  func.func @transform_0(%arg0: i32) -> (i32, i32) {
    %c0_i32 = arith.constant 0 : i32
    %c0_i32_0 = arith.constant 0 : i32
    return %arg0, %c0_i32 : i32, i32
  }
  func.func @transform_1(%arg0: i32) -> (i32, i32) {
    %c0_i32 = arith.constant 0 : i32
    %c0_i32_0 = arith.constant 0 : i32
    return %arg0, %c0_i32 : i32, i32
  }
  func.func @transform_2(%arg0: i32) -> (i32, i32) {
    %c0_i32 = arith.constant 0 : i32
    %c0_i32_0 = arith.constant 0 : i32
    %c0_i32_1 = arith.constant 0 : i32
    return %c0_i32, %c0_i32_0 : i32, i32
  }
  func.func @transform_3(%arg0: i32) -> (i32, i32) {
    %c0_i32 = arith.constant 0 : i32
    %c0_i32_0 = arith.constant 0 : i32
    %c0_i32_1 = arith.constant 0 : i32
    return %c0_i32, %c0_i32_0 : i32, i32
  }
  func.func @transform_4(%arg0: i32) -> (i32, i32) {
    %c0_i32 = arith.constant 0 : i32
    %c0_i32_0 = arith.constant 0 : i32
    %c0_i32_1 = arith.constant 0 : i32
    return %c0_i32, %c0_i32_0 : i32, i32
  }
  func.func @transform_5(%arg0: i32) -> (i32, i32) {
    %c0_i32 = arith.constant 0 : i32
    %c0_i32_0 = arith.constant 0 : i32
    return %arg0, %c0_i32 : i32, i32
  }
}

</mosaic_0001>

<bundles_post_ra>
// kernel: tpu_custom_call.1
= control target key start
LH: loop header
LB: loop body
LE: loop exit
PB: predicated region body
PF: predicated region fallthrough
CT: control target
= control target key end

     0   :  { %s1361_s22 = smov 112   ;;  %vm90_vm0 = vcmask 130048   ;;  %vm1339_vm1 = vcmask 64512   ;;  %s1972_s0 = inlined_call_operand.vmem [shape: f32[64,32], index: 0, kind: input, shape index: {}]   ;;  %s1973_s2 = inlined_call_operand.vmem [shape: f32[16,8], index: 2, kind: input, shape index: {}]   ;;  %s1974_s3 = inlined_call_operand.vmem [shape: f32[16,8], index: 3, kind: input, shape index: {}]   ;;  %s1975_s4 = inlined_call_operand.vmem [shape: f32[16,8], index: 4, kind: input, shape index: {}]   ;;  %s1976_s1 = inlined_call_operand.vmem [shape: f32[64,1], index: 1, kind: input, shape index: {}]   ;;  %s1977_s5 = inlined_call_operand.vmem [shape: f32[64,8], index: 5, kind: output, shape index: {}]  }
   0x1   :  { %v24_v0 = vld [vmem:[%s1972_s0 + $0x20] sm:$0xff]  ;;  %v21_v2 = vld [vmem:[%s1972_s0 + $0x8] sm:$0xff]  ;;  %v1410_v4 = vld [vmem:[%s1972_s0 + $0x30] sm:$0xff] }
   0x2   :  { %v20_v1 = vld [vmem:[%s1972_s0] sm:$0xff]  ;;  %44 = vrot.lane.b32.xlu0 %v24_v0, %s1361_s22  ;;  %38 = vrot.lane.b32.xlu2 %v21_v2, %s1361_s22  ;;  %v1405_v3 = vld [vmem:[%s1972_s0 + $0x28] sm:$0xff] }
   0x3   :  { %36 = vrot.lane.b32.xlu1 %v20_v1, %s1361_s22  ;;  %v1415_v5 = vld [vmem:[%s1972_s0 + $0x38] sm:$0xff]  ;;  %v1423_v6 = vld [vmem:[%s1972_s0 + $0x10] sm:$0xff]  ;;  %v77_v8 = vld [vmem:[%s1973_s2 + $0x8] sm:$0xff] }
   0x4   :  { %v1428_v7 = vld [vmem:[%s1972_s0 + $0x18] sm:$0xff]  ;;  %v129_v9 = vand.u32 4294901760, %v77_v8  ;;  %v76_v10 = vld [vmem:[%s1973_s2] sm:$0xff] }
   0x5   :  { %v131_v12 = vand.u32 4294901760, %v76_v10 }
   0x6   :  { %v213_v11 = vsub.f32 %v77_v8, %v129_v9  ;;  %130 = vmatpush.msra.mxu0 %v129_v9  ;;  %1352 = vmatpush.msra.mxu2 %v129_v9 }
   0x7   :  { %v219_v14 = vsub.f32 %v76_v10, %v131_v12 }
   0x8   :  { %v214_v13 = vand.u32 4294901760, %v213_v11  ;;  %132 = vmatpush.msra.mxu0 %v131_v12  ;;  %1353 = vmatpush.msra.mxu2 %v131_v12 }
   0x9   :  { %v220_v16 = vand.u32 4294901760, %v219_v14 }
   0xa   :  { %46 = vrot.lane.b32.xlu0 %v1405_v3, %s1361_s22  ;;  %50 = vrot.lane.b32.xlu2 %v1415_v5, %s1361_s22  ;;  %v215_v15 = vsub.f32 %v213_v11, %v214_v13 }
   0xb   :  { %48 = vrot.lane.b32.xlu1 %v1410_v4, %s1361_s22  ;;  %273 = vmatpush.msrb.mxu2 %v213_v11  ;;  %v221_v18 = vsub.f32 %v219_v14, %v220_v16 }
   0xc   :  { %402 = vmatpush.msrb.mxu0 %v214_v13  ;;  %v216_v17 = vand.u32 4294901760, %v215_v15 }
   0xd   :  { %276 = vmatpush.msrb.mxu2 %v219_v14  ;;  %v222_v19 = vand.u32 4294901760, %v221_v18 }
   0xe   :  { %406 = vmatpush.msrb.mxu0 %v220_v16  ;;  %217 = vmatpush.msra.mxu1 %v216_v17 }
   0xf   :  { %1354 = vmatpush.msra.mxu3 %v216_v17 }
  0x10   :  { %223 = vmatpush.msra.mxu1 %v222_v19 }
  0x11   :  { %1355 = vmatpush.msra.mxu3 %v222_v19 }
  0x12   :  { %40 = vrot.lane.b32.xlu0 %v1423_v6, %s1361_s22  ;;  %455 = vmatpush.msrb.mxu1 %v129_v9 }
  0x13   :  { %42 = vrot.lane.b32.xlu1 %v1428_v7, %s1361_s22  ;;  %333 = vmatpush.msrb.mxu3 %v129_v9 }
  0x14   :  { %457 = vmatpush.msrb.mxu1 %v131_v12 }
  0x15   :  { %335 = vmatpush.msrb.mxu3 %v131_v12 }
  0x5c   :  { %v39_v20 = vpop.permute.xlu2 %38 }
  0x5d   :  { %v69_v21 = vmax.f32 %v21_v2, %v39_v20  ;;  %v61_v23 = vadd.f32 %v39_v20, %v21_v2 }
  0x5f   :  { %v1439_v22 = vsel %vm90_vm0, %v69_v21, 0  ;;  %v95_v24 = vsel %vm90_vm0, %v61_v23, 0 }
  0x60   :  { %v1442_v31 = vand.u32 4294901760, %v95_v24 }
  0x62   :  { %v1464_v40 = vsub.f32 %v95_v24, %v1442_v31 }
  0x64   :  { %v143_v51 = vand.u32 4294901760, %v1464_v40  ;;  %v1488_v56 = vpop.permute.xlu2 %50 }
  0x65   :  { %v67_v62 = vadd.f32 %v1488_v56, %v1415_v5 }
  0x66   :  { %v144_v63 = vsub.f32 %v1464_v40, %v143_v51 }
  0x67   :  { %v113_v10 = vsel %vm90_vm0, %v67_v62, 0 }
  0x68   :  { %v145_v14 = vand.u32 4294901760, %v144_v63  ;;  %v1527_v19 = vand.u32 4294901760, %v113_v10 }
  0x74   :  { %v45_v25 = vpop.permute.xlu0 %44 }
  0x75   :  { %v37_v26 = vpop.permute.xlu1 %36  ;;  %v64_v27 = vadd.f32 %v45_v25, %v24_v0  ;;  %v72_v28 = vmax.f32 %v24_v0, %v45_v25 }
  0x76   :  { %v60_v29 = vadd.f32 %v37_v26, %v20_v1  ;;  %v68_v30 = vmax.f32 %v20_v1, %v37_v26 }
  0x77   :  { %v104_v32 = vsel %vm90_vm0, %v64_v27, 0  ;;  %v1446_v33 = vsel %vm90_vm0, %v72_v28, 0  ;;  %v1533_v27 = vsub.f32 %v113_v10, %v1527_v19 }
  0x78   :  { %v92_v34 = vsel %vm90_vm0, %v60_v29, 0  ;;  %v1450_v35 = vsel %vm90_vm0, %v68_v30, 0  ;;  %v1452_v36 = vand.u32 4294901760, %v104_v32 }
  0x79   :  { %v1454_v37 = vand.u32 4294901760, %v92_v34 }
  0x7a   :  { %v1457_v38 = vsub.f32 %v104_v32, %v1452_v36  ;;  %241 = vmatmul.f32.vlgmr.msra.gmra.mxu3 %v1452_v36 }
  0x7b   :  { %v1460_v39 = vsub.f32 %v92_v34, %v1454_v37  ;;  %225 = vmatmul.f32.vlgmr.msra.gmra.mxu1 %v1454_v37 }
  0x7c   :  { %v47_v41 = vpop.permute.xlu0 %46  ;;  %v167_v44 = vand.u32 4294901760, %v1457_v38 }
  0x7d   :  { %v49_v42 = vpop.permute.xlu1 %48  ;;  %v135_v43 = vand.u32 4294901760, %v1460_v39  ;;  %v65_v45 = vadd.f32 %v47_v41, %v1405_v3  ;;  %v73_v46 = vmax.f32 %v1405_v3, %v47_v41  ;;  %v79_v3 = vld [vmem:[%s1974_s3 + $0x8] sm:$0xff] }
  0x7e   :  { %v66_v47 = vadd.f32 %v49_v42, %v1410_v4  ;;  %v74_v48 = vmax.f32 %v1410_v4, %v49_v42  ;;  %v168_v50 = vsub.f32 %v1457_v38, %v167_v44  ;;  %v529_v12 = vand.u32 4294901760, %v79_v3 }
  0x7f   :  { %v136_v49 = vsub.f32 %v1460_v39, %v135_v43  ;;  %v107_v52 = vsel %vm90_vm0, %v65_v45, 0  ;;  %v1482_v53 = vsel %vm90_vm0, %v73_v46, 0  ;;  %v191_v45 = vand.u32 4294901760, %v1533_v27 }
  0x80   :  { %v110_v54 = vsel %vm90_vm0, %v66_v47, 0  ;;  %v1486_v55 = vsel %vm90_vm0, %v74_v48, 0  ;;  %v1490_v57 = vand.u32 4294901760, %v107_v52  ;;  %v169_v60 = vand.u32 4294901760, %v168_v50  ;;  %733 = vmatpush.msra.mxu1 %v529_v12  ;;  %v78_v50 = vld [vmem:[%s1974_s3] sm:$0xff] }
  0x81   :  { %v1492_v58 = vand.u32 4294901760, %v110_v54  ;;  %v137_v59 = vand.u32 4294901760, %v136_v49  ;;  %v613_v21 = vsub.f32 %v79_v3, %v529_v12  ;;  %v192_v47 = vsub.f32 %v1533_v27, %v191_v45 }
  0x82   :  { %v1495_v61 = vsub.f32 %v107_v52, %v1490_v57  ;;  %170 = vmatmul.f32.vlgmr.msra.gmra.mxu2 %v169_v60  ;;  %245 = vmatmul.f32.gmra.mxu3 %v1490_v57  ;;  %v531_v52 = vand.u32 4294901760, %v78_v50  ;;  %v1592_v60 = vand.u32 4294901760, %v1439_v22 }
  0x83   :  { %229 = vmatmul.f32.gmra.mxu1 %v1442_v31  ;;  %138 = vmatmul.f32.vlgmr.msra.gmra.mxu0 %v137_v59  ;;  %v1513_v4 = vsub.f32 %v110_v54, %v1492_v58  ;;  %v614_v25 = vand.u32 4294901760, %v613_v21  ;;  %v193_v49 = vand.u32 4294901760, %v192_v47 }
  0x84   :  { %v1504_v0 = vpop.permute.xlu0 %40  ;;  %v175_v1 = vand.u32 4294901760, %v1495_v61  ;;  %530 = vmatpush.msra.mxu2 %v529_v12  ;;  %673 = vmatpush.msra.mxu0 %v613_v21  ;;  %v619_v54 = vsub.f32 %v78_v50, %v531_v52 }
  0x85   :  { %v1507_v2 = vpop.permute.xlu1 %42  ;;  %v62_v8 = vadd.f32 %v1504_v0, %v1423_v6  ;;  %v183_v20 = vand.u32 4294901760, %v1513_v4  ;;  %v615_v29 = vsub.f32 %v613_v21, %v614_v25  ;;  %735 = vmatpush.msra.mxu1 %v531_v52  ;;  %v70_v62 = vmax.f32 %v1423_v6, %v1504_v0 }
  0x86   :  { %v63_v9 = vadd.f32 %v1507_v2, %v1428_v7  ;;  %v176_v11 = vsub.f32 %v1495_v61, %v175_v1  ;;  %532 = vmatpush.msra.mxu2 %v531_v52  ;;  %v620_v59 = vand.u32 4294901760, %v619_v54  ;;  %676 = vmatpush.msra.mxu0 %v619_v54 }
  0x87   :  { %v98_v13 = vsel %vm90_vm0, %v62_v8, 0  ;;  %v184_v28 = vsub.f32 %v1513_v4, %v183_v20  ;;  %v616_v34 = vand.u32 4294901760, %v615_v29 }
  0x88   :  { %v101_v15 = vsel %vm90_vm0, %v63_v9, 0  ;;  %v149_v16 = vand.u32 4294901760, %v98_v13  ;;  %v177_v17 = vand.u32 4294901760, %v176_v11  ;;  %v80_v11 = vld [vmem:[%s1975_s4] sm:$0xff] }
  0x89   :  { %v1525_v18 = vand.u32 4294901760, %v101_v15  ;;  %v185_v42 = vand.u32 4294901760, %v184_v28  ;;  %617 = vmatpush.msra.mxu3 %v616_v34 }
  0x8a   :  { %v150_v23 = vsub.f32 %v98_v13, %v149_v16  ;;  %178 = vmatmul.f32.gmra.mxu2 %v177_v17  ;;  %249 = vmatmul.f32.gmra.mxu3 %v1492_v58  ;;  %v907_v13 = vand.u32 4294901760, %v80_v11 }
  0x8b   :  { %233 = vmatmul.f32.gmra.mxu1 %v149_v16  ;;  %146 = vmatmul.f32.gmra.mxu0 %v145_v14  ;;  %v158_v24 = vsub.f32 %v101_v15, %v1525_v18  ;;  %v1650_v15 = vand.u32 4294901760, %v1446_v33 }
  0x8c   :  { %v151_v26 = vand.u32 4294901760, %v150_v23  ;;  %v995_v14 = vsub.f32 %v80_v11, %v907_v13 }
  0x8d   :  { %v159_v32 = vand.u32 4294901760, %v158_v24 }
  0x8e   :  { %v152_v30 = vsub.f32 %v150_v23, %v151_v26 }
  0x8f   :  { %v160_v46 = vsub.f32 %v158_v24, %v159_v32 }
  0x90   :  { %v153_v41 = vand.u32 4294901760, %v152_v30 }
  0x91   :  { %v161_v48 = vand.u32 4294901760, %v160_v46 }
  0x92   :  { %186 = vmatmul.f32.gmra.mxu2 %v185_v42  ;;  %253 = vmatmul.f32.gmra.mxu3 %v1527_v19 }
  0x93   :  { %237 = vmatmul.f32.gmra.mxu1 %v1525_v18  ;;  %154 = vmatmul.f32.gmra.mxu0 %v153_v41 }
  0x9a   :  { %194 = vmatmul.f32.gmra.mxu2 %v193_v49  ;;  %339 = vmatmul.f32.vlgmr.msrb.gmra.mxu3 %v135_v43 }
  0x9b   :  { %459 = vmatmul.f32.vlgmr.msrb.gmra.mxu1 %v1454_v37  ;;  %162 = vmatmul.f32.gmra.mxu0 %v161_v48 }
  0xa2   :  { %279 = vmatmul.f32.vlgmr.msrb.gmra.mxu2 %v1460_v39  ;;  %345 = vmatmul.f32.gmra.mxu3 %v143_v51 }
  0xa3   :  { %463 = vmatmul.f32.gmra.mxu1 %v1442_v31  ;;  %408 = vmatmul.f32.vlgmr.msrb.gmra.mxu0 %v1454_v37  ;;  %v621_v37 = vsub.f32 %v619_v54, %v620_v59 }
  0xa4   :  { %802 = vmatpush.msrb.mxu2 %v614_v25  ;;  %v1670_v25 = vand.u32 4294901760, %v1482_v53 }
  0xa5   :  { %v622_v39 = vand.u32 4294901760, %v621_v37 }
  0xa6   :  { %806 = vmatpush.msrb.mxu2 %v620_v59 }
  0xa7   :  { %623 = vmatpush.msra.mxu3 %v622_v39 }
  0xa9   :  { %855 = vmatpush.msrb.mxu3 %v529_v12 }
  0xaa   :  { %284 = vmatmul.f32.gmra.mxu2 %v1464_v40  ;;  %351 = vmatmul.f32.gmra.mxu3 %v151_v26 }
  0xab   :  { %467 = vmatmul.f32.gmra.mxu1 %v149_v16  ;;  %412 = vmatmul.f32.gmra.mxu0 %v1442_v31  ;;  %v81_v31 = vld [vmem:[%s1975_s4 + $0x8] sm:$0xff] }
  0xac   :  { %857 = vmatpush.msrb.mxu3 %v531_v52  ;;  %v1575_v40 = vand.u32 4294901760, %v81_v31 }
  0xae   :  { %906 = vmatpush.msrb.mxu0 %v1575_v40 }
  0xb0   :  { %908 = vmatpush.msrb.mxu0 %v907_v13 }
  0xb2   :  { %289 = vmatmul.f32.gmra.mxu2 %v150_v23  ;;  %357 = vmatmul.f32.gmra.mxu3 %v159_v32  ;;  %v1691_v32 = vand.u32 4294901760, %v1486_v55 }
  0xb3   :  { %471 = vmatmul.f32.gmra.mxu1 %v1525_v18  ;;  %416 = vmatmul.f32.gmra.mxu0 %v149_v16 }
  0xba   :  { %294 = vmatmul.f32.gmra.mxu2 %v158_v24  ;;  %363 = vmatmul.f32.gmra.mxu3 %v167_v44 }
  0xbb   :  { %475 = vmatmul.f32.gmra.mxu1 %v1452_v36  ;;  %420 = vmatmul.f32.gmra.mxu0 %v1525_v18  ;;  %v996_v18 = vand.u32 4294901760, %v995_v14 }
  0xc2   :  { %299 = vmatmul.f32.gmra.mxu2 %v1457_v38  ;;  %369 = vmatmul.f32.gmra.mxu3 %v175_v1  ;;  %v1580_v38 = vand.u32 4294901760, %v1450_v35  ;;  %v71_v1 = vmax.f32 %v1428_v7, %v1507_v2 }
  0xc3   :  { %479 = vmatmul.f32.gmra.mxu1 %v1490_v57  ;;  %424 = vmatmul.f32.gmra.mxu0 %v1452_v36  ;;  %v989_v36 = vsub.f32 %v81_v31, %v1575_v40 }
  0xc4   :  { %v1587_v51 = vsub.f32 %v1450_v35, %v1580_v38  ;;  %v1604_v35 = vsub.f32 %v1439_v22, %v1592_v60 }
  0xc5   :  { %v990_v43 = vand.u32 4294901760, %v989_v36 }
  0xc6   :  { %v1614_v0 = vand.u32 4294901760, %v1604_v35 }
  0xc7   :  { %v991_v44 = vsub.f32 %v989_v36, %v990_v43 }
  0xc8   :  { %v544_v8 = vsub.f32 %v1604_v35, %v1614_v0 }
  0xca   :  { %304 = vmatmul.f32.gmra.mxu2 %v1495_v61  ;;  %375 = vmatmul.f32.gmra.mxu3 %v183_v20  ;;  %v1595_v61 = vand.u32 4294901760, %v1587_v51  ;;  %v1635_v9 = vand.u32 4294901760, %v544_v8  ;;  %v1662_v20 = vsub.f32 %v1446_v33, %v1650_v15 }
  0xcb   :  { %483 = vmatmul.f32.gmra.mxu1 %v1492_v58  ;;  %428 = vmatmul.f32.gmra.mxu0 %v1490_v57  ;;  %v992_v57 = vand.u32 4294901760, %v991_v44 }
  0xcc   :  { %v536_v63 = vsub.f32 %v1587_v51, %v1595_v61  ;;  %v1673_v26 = vand.u32 4294901760, %v1662_v20 }
  0xcd   :  { %993 = vmatpush.msrb.mxu1 %v992_v57 }
  0xce   :  { %v1618_v3 = vand.u32 4294901760, %v536_v63  ;;  %v568_v28 = vsub.f32 %v1662_v20, %v1673_v26 }
  0xd0   :  { %v1698_v42 = vand.u32 4294901760, %v568_v28 }
  0xd2   :  { %309 = vmatmul.f32.gmra.mxu2 %v1513_v4  ;;  %381 = vmatmul.f32.gmra.mxu3 %v191_v45  ;;  %v501_v4 = vsel %vm90_vm0, %v71_v1, 0  ;;  %v1705_v45 = vsub.f32 %v1486_v55, %v1691_v32 }
  0xd3   :  { %487 = vmatmul.f32.gmra.mxu1 %v1527_v19  ;;  %432 = vmatmul.f32.gmra.mxu0 %v1492_v58  ;;  %v498_v58 = vsel %vm90_vm0, %v70_v62, 0  ;;  %v1630_v7 = vand.u32 4294901760, %v501_v4 }
  0xd4   :  { %v1611_v6 = vand.u32 4294901760, %v498_v58  ;;  %v1718_v54 = vand.u32 4294901760, %v1705_v45 }
  0xd5   :  { %v1641_v10 = vsub.f32 %v501_v4, %v1630_v7 }
  0xd6   :  { %v1624_v22 = vsub.f32 %v498_v58, %v1611_v6  ;;  %v584_v37 = vsub.f32 %v1705_v45, %v1718_v54 }
  0xd7   :  { %v1653_v16 = vand.u32 4294901760, %v1641_v10 }
  0xd8   :  { %v1633_v2 = vand.u32 4294901760, %v1624_v22  ;;  %v1738_v57 = vand.u32 4294901760, %v584_v37 }
  0xd9   :  { %v560_v21 = vsub.f32 %v1641_v10, %v1653_v16 }
  0xda   :  { %314 = vmatmul.f32.gmra.mxu2 %v1533_v27  ;;  %625 = vmatmul.f32.vlgmr.msra.gmra.mxu3 %v1580_v38  ;;  %v552_v12 = vsub.f32 %v1624_v22, %v1633_v2  ;;  %v1683_v27 = vsub.f32 %v1482_v53, %v1670_v25  ;;  %v75_v53 = vmax.f32 %v1415_v5, %v1488_v56 }
  0xdb   :  { %739 = vmatmul.f32.vlgmr.msra.gmra.mxu1 %v1595_v61  ;;  %436 = vmatmul.f32.gmra.mxu0 %v1527_v19  ;;  %v997_v19 = vsub.f32 %v995_v14, %v996_v18  ;;  %v1676_v33 = vand.u32 4294901760, %v560_v21 }
  0xdc   :  { %1109 = vmatpush.msra.mxu3 %v1575_v40  ;;  %v1655_v17 = vand.u32 4294901760, %v552_v12  ;;  %v1694_v41 = vand.u32 4294901760, %v1683_v27  ;;  %v513_v46 = vsel %vm90_vm0, %v75_v53, 0 }
  0xdd   :  { %v998_v23 = vand.u32 4294901760, %v997_v19  ;;  %v1715_v50 = vand.u32 4294901760, %v513_v46 }
  0xde   :  { %1111 = vmatpush.msra.mxu3 %v907_v13  ;;  %v576_v47 = vsub.f32 %v1683_v27, %v1694_v41 }
  0xdf   :  { %999 = vmatpush.msrb.mxu1 %v998_v23  ;;  %v1726_v59 = vsub.f32 %v513_v46, %v1715_v50 }
  0xe0   :  { %v1720_v55 = vand.u32 4294901760, %v576_v47 }
  0xe1   :  { %1231 = vmatpush.msra.mxu1 %v1575_v40  ;;  %v1736_v44 = vand.u32 4294901760, %v1726_v59 }
  0xe2   :  { %538 = vmatmul.f32.vlgmr.msra.gmra.mxu2 %v1618_v3  ;;  %629 = vmatmul.f32.gmra.mxu3 %v1592_v60 }
  0xe3   :  { %745 = vmatmul.f32.gmra.mxu1 %v1614_v0  ;;  %679 = vmatmul.f32.vlgmr.msra.gmra.mxu0 %v1587_v51  ;;  %v592_v62 = vsub.f32 %v1726_v59, %v1736_v44 }
  0xe4   :  { %1049 = vmatpush.msra.mxu2 %v989_v36  ;;  %1178 = vmatpush.msra.mxu0 %v990_v43 }
  0xe5   :  { %1233 = vmatpush.msra.mxu1 %v907_v13  ;;  %v1748_v11 = vand.u32 4294901760, %v592_v62 }
  0xe6   :  { %1052 = vmatpush.msra.mxu2 %v995_v14  ;;  %1182 = vmatpush.msra.mxu0 %v996_v18 }
  0xea   :  { %546 = vmatmul.f32.gmra.mxu2 %v1635_v9  ;;  %633 = vmatmul.f32.gmra.mxu3 %v1611_v6 }
  0xeb   :  { %751 = vmatmul.f32.gmra.mxu1 %v1633_v2  ;;  %684 = vmatmul.f32.gmra.mxu0 %v1604_v35 }
  0xf2   :  { %554 = vmatmul.f32.gmra.mxu2 %v1655_v17  ;;  %637 = vmatmul.f32.gmra.mxu3 %v1630_v7 }
  0xf3   :  { %757 = vmatmul.f32.gmra.mxu1 %v1653_v16  ;;  %689 = vmatmul.f32.gmra.mxu0 %v1624_v22 }
  0xf8   :  { %v1667_v24 = vpop.f32.mrf.mxu1 }
  0xfa   :  { %562 = vmatmul.f32.gmra.mxu2 %v1676_v33  ;;  %641 = vmatmul.f32.gmra.mxu3 %v1650_v15 }
  0xfb   :  { %763 = vmatmul.f32.gmra.mxu1 %v1673_v26  ;;  %694 = vmatmul.f32.gmra.mxu0 %v1641_v10 }
  0xfd   :  { %v242_v29 = vpop.f32.mrf.mxu3 }
 0x100   :  { %v1688_v30 = vpop.f32.mrf.mxu1  ;;  %v139_v34 = vpop.f32.mrf.mxu0 }
 0x101   :  { %v227_v21 = vadd.f32 %v1667_v24, %v139_v34 }
 0x102   :  { %570 = vmatmul.f32.gmra.mxu2 %v1698_v42  ;;  %645 = vmatmul.f32.gmra.mxu3 %v1670_v25 }
 0x103   :  { %769 = vmatmul.f32.gmra.mxu1 %v1694_v41  ;;  %699 = vmatmul.f32.gmra.mxu0 %v1662_v20 }
 0x105   :  { %v171_v5 = vpop.f32.mrf.mxu2  ;;  %v246_v48 = vpop.f32.mrf.mxu3 }
 0x106   :  { %v1711_v56 = vadd.f32 %v242_v29, %v171_v5 }
 0x108   :  { %v1713_v49 = vpop.f32.mrf.mxu1  ;;  %v147_v52 = vpop.f32.mrf.mxu0 }
 0x10a   :  { %578 = vmatmul.f32.gmra.mxu2 %v1720_v55  ;;  %649 = vmatmul.f32.gmra.mxu3 %v1691_v32 }
 0x10b   :  { %775 = vmatmul.f32.gmra.mxu1 %v1718_v54  ;;  %704 = vmatmul.f32.gmra.mxu0 %v1683_v27 }
 0x10d   :  { %v179_v39 = vpop.f32.mrf.mxu2  ;;  %v250_v40 = vpop.f32.mrf.mxu3 }
 0x10e   :  { %v1731_v31 = vadd.f32 %v246_v48, %v179_v39 }
 0x110   :  { %v1733_v36 = vpop.f32.mrf.mxu1  ;;  %v155_v43 = vpop.f32.mrf.mxu0 }
 0x112   :  { %586 = vmatmul.f32.gmra.mxu2 %v1738_v57  ;;  %653 = vmatmul.f32.gmra.mxu3 %v1715_v50 }
 0x113   :  { %781 = vmatmul.f32.gmra.mxu1 %v1736_v44  ;;  %709 = vmatmul.f32.gmra.mxu0 %v1705_v45 }
 0x115   :  { %v187_v58 = vpop.f32.mrf.mxu2  ;;  %v254_v1 = vpop.f32.mrf.mxu3 }
 0x116   :  { %v1746_v63 = vadd.f32 %v250_v40, %v187_v58 }
 0x118   :  { %v460_v4 = vpop.f32.mrf.mxu1  ;;  %v163_v8 = vpop.f32.mrf.mxu0 }
 0x11a   :  { %594 = vmatmul.f32.gmra.mxu2 %v1748_v11  ;;  %859 = vmatmul.f32.vlgmr.msrb.gmra.mxu3 %v1580_v38 }
 0x11b   :  { %1001 = vmatmul.f32.vlgmr.msrb.gmra.mxu1 %v1580_v38  ;;  %714 = vmatmul.f32.gmra.mxu0 %v1726_v59 }
 0x11d   :  { %v195_v12 = vpop.f32.mrf.mxu2  ;;  %v340_v14 = vpop.f32.mrf.mxu3 }
 0x11e   :  { %v1754_v13 = vadd.f32 %v254_v1, %v195_v12 }
 0x120   :  { %v464_v18 = vpop.f32.mrf.mxu1  ;;  %v409_v19 = vpop.f32.mrf.mxu0 }
 0x122   :  { %808 = vmatmul.f32.vlgmr.msrb.gmra.mxu2 %v1580_v38  ;;  %863 = vmatmul.f32.gmra.mxu3 %v1592_v60 }
 0x123   :  { %1005 = vmatmul.f32.gmra.mxu1 %v1592_v60  ;;  %914 = vmatmul.f32.vlgmr.msrb.gmra.mxu0 %v1618_v3  ;;  %v231_v3 = vadd.f32 %v1688_v30, %v147_v52 }
 0x125   :  { %v280_v23 = vpop.f32.mrf.mxu2  ;;  %v346_v29 = vpop.f32.mrf.mxu3 }
 0x126   :  { %v281_v28 = vadd.f32 %v280_v23, %v227_v21 }
 0x128   :  { %v468_v53 = vpop.f32.mrf.mxu1  ;;  %v413_v46 = vpop.f32.mrf.mxu0  ;;  %v341_v47 = vadd.f32 %v340_v14, %v281_v28 }
 0x12a   :  { %v410_v5 = vadd.f32 %v409_v19, %v341_v47  ;;  %812 = vmatmul.f32.gmra.mxu2 %v1592_v60  ;;  %867 = vmatmul.f32.gmra.mxu3 %v1611_v6 }
 0x12b   :  { %1009 = vmatmul.f32.gmra.mxu1 %v1611_v6  ;;  %922 = vmatmul.f32.gmra.mxu0 %v1635_v9  ;;  %v235_v9 = vadd.f32 %v1713_v49, %v155_v43 }
 0x12c   :  { %v1766_v48 = vadd.f32 %v460_v4, %v410_v5 }
 0x12d   :  { %v285_v24 = vpop.f32.mrf.mxu2  ;;  %v352_v37 = vpop.f32.mrf.mxu3 }
 0x12e   :  { %v286_v34 = vadd.f32 %v285_v24, %v231_v3 }
 0x130   :  { %v472_v39 = vpop.f32.mrf.mxu1  ;;  %v417_v40 = vpop.f32.mrf.mxu0  ;;  %v347_v62 = vadd.f32 %v346_v29, %v286_v34 }
 0x132   :  { %v414_v58 = vadd.f32 %v413_v46, %v347_v62  ;;  %816 = vmatmul.f32.gmra.mxu2 %v1611_v6  ;;  %871 = vmatmul.f32.gmra.mxu3 %v1630_v7 }
 0x133   :  { %1013 = vmatmul.f32.gmra.mxu1 %v1630_v7  ;;  %930 = vmatmul.f32.gmra.mxu0 %v1655_v17  ;;  %v239_v17 = vadd.f32 %v1733_v36, %v163_v8 }
 0x134   :  { %v1773_v30 = vadd.f32 %v464_v18, %v414_v58 }
 0x135   :  { %v290_v52 = vpop.f32.mrf.mxu2  ;;  %v358_v4 = vpop.f32.mrf.mxu3 }
 0x136   :  { %v291_v1 = vadd.f32 %v290_v52, %v235_v9 }
 0x138   :  { %v476_v12 = vpop.f32.mrf.mxu1  ;;  %v421_v14 = vpop.f32.mrf.mxu0  ;;  %v353_v19 = vadd.f32 %v352_v37, %v291_v1 }
 0x13a   :  { %v418_v21 = vadd.f32 %v417_v40, %v353_v19  ;;  %820 = vmatmul.f32.gmra.mxu2 %v1630_v7  ;;  %875 = vmatmul.f32.gmra.mxu3 %v1650_v15 }
 0x13b   :  { %1017 = vmatmul.f32.gmra.mxu1 %v1650_v15  ;;  %938 = vmatmul.f32.gmra.mxu0 %v1676_v33 }
 0x13c   :  { %v1780_v49 = vadd.f32 %v468_v53, %v418_v21 }
 0x13d   :  { %v295_v43 = vpop.f32.mrf.mxu2  ;;  %v364_v23 = vpop.f32.mrf.mxu3 }
 0x13e   :  { %v296_v18 = vadd.f32 %v295_v43, %v239_v17 }
 0x140   :  { %v480_v28 = vpop.f32.mrf.mxu1  ;;  %v425_v29 = vpop.f32.mrf.mxu0  ;;  %v359_v46 = vadd.f32 %v358_v4, %v296_v18 }
 0x142   :  { %v422_v47 = vadd.f32 %v421_v14, %v359_v46  ;;  %824 = vmatmul.f32.gmra.mxu2 %v1650_v15  ;;  %879 = vmatmul.f32.gmra.mxu3 %v1670_v25 }
 0x143   :  { %1021 = vmatmul.f32.gmra.mxu1 %v1670_v25  ;;  %946 = vmatmul.f32.gmra.mxu0 %v1698_v42 }
 0x144   :  { %v1786_v33 = vadd.f32 %v472_v39, %v422_v47 }
 0x145   :  { %v300_v36 = vpop.f32.mrf.mxu2  ;;  %v370_v53 = vpop.f32.mrf.mxu3 }
 0x146   :  { %v301_v8 = vadd.f32 %v300_v36, %v1711_v56 }
 0x148   :  { %v484_v5 = vpop.f32.mrf.mxu1  ;;  %v429_v3 = vpop.f32.mrf.mxu0  ;;  %v365_v24 = vadd.f32 %v364_v23, %v301_v8 }
 0x14a   :  { %v426_v34 = vadd.f32 %v425_v29, %v365_v24  ;;  %828 = vmatmul.f32.gmra.mxu2 %v1670_v25  ;;  %883 = vmatmul.f32.gmra.mxu3 %v1691_v32 }
 0x14b   :  { %1025 = vmatmul.f32.gmra.mxu1 %v1691_v32  ;;  %954 = vmatmul.f32.gmra.mxu0 %v1720_v55 }
 0x14c   :  { %v1793_v42 = vadd.f32 %v476_v12, %v426_v34 }
 0x14d   :  { %v305_v37 = vpop.f32.mrf.mxu2  ;;  %v376_v40 = vpop.f32.mrf.mxu3 }
 0x14e   :  { %v306_v39 = vadd.f32 %v305_v37, %v1731_v31 }
 0x150   :  { %v488_v56 = vpop.f32.mrf.mxu1  ;;  %v433_v62 = vpop.f32.mrf.mxu0  ;;  %v371_v58 = vadd.f32 %v370_v53, %v306_v39 }
 0x152   :  { %v430_v9 = vadd.f32 %v429_v3, %v371_v58  ;;  %832 = vmatmul.f32.gmra.mxu2 %v1691_v32  ;;  %887 = vmatmul.f32.gmra.mxu3 %v1715_v50 }
 0x153   :  { %1029 = vmatmul.f32.gmra.mxu1 %v1715_v50  ;;  %962 = vmatmul.f32.gmra.mxu0 %v1738_v57 }
 0x154   :  { %v1800_v55 = vadd.f32 %v480_v28, %v430_v9 }
 0x155   :  { %v310_v52 = vpop.f32.mrf.mxu2  ;;  %v382_v4 = vpop.f32.mrf.mxu3 }
 0x156   :  { %v311_v1 = vadd.f32 %v310_v52, %v1746_v63 }
 0x158   :  { %v740_v31 = vpop.f32.mrf.mxu1  ;;  %v437_v12 = vpop.f32.mrf.mxu0  ;;  %v377_v14 = vadd.f32 %v376_v40, %v311_v1 }
 0x15a   :  { %v434_v19 = vadd.f32 %v433_v62, %v377_v14  ;;  %836 = vmatmul.f32.gmra.mxu2 %v1715_v50  ;;  %1115 = vmatmul.f32.vlgmr.msra.gmra.mxu3 %v1595_v61  ;;  %v83_v61 = vld [vmem:[%s1976_s1 + $0x8] sm:$0xff] }
 0x15b   :  { %1235 = vmatmul.f32.vlgmr.msra.gmra.mxu1 %v1580_v38  ;;  %970 = vmatmul.f32.gmra.mxu0 %v1748_v11 }
 0x15c   :  { %v1807_v57 = vadd.f32 %v484_v5, %v434_v19 }
 0x15d   :  { %v315_v21 = vpop.f32.mrf.mxu2  ;;  %v626_v43 = vpop.f32.mrf.mxu3 }
 0x15e   :  { %v316_v17 = vadd.f32 %v315_v21, %v1754_v13  ;;  %v1362_v13 = vmov 0  }
 0x15f   :  { %1359 = vset.pattern.permute.xlu0 %v1362_v13  ;;  %1360 = vset.pattern.permute.xlu1 %v1362_v13 }
 0x160   :  { %v746_v63 = vpop.f32.mrf.mxu1  ;;  %v680_v18 = vpop.f32.mrf.mxu0  ;;  %v383_v23 = vadd.f32 %v382_v4, %v316_v17  ;;  %1290 = vperm.xlu0 %1359, %v83_v61   ;;  %1358 = vset.pattern.permute.xlu2 %v1362_v13 }
 0x162   :  { %v438_v28 = vadd.f32 %v437_v12, %v383_v23  ;;  %1055 = vmatmul.f32.vlgmr.msra.gmra.mxu2 %v1587_v51  ;;  %1121 = vmatmul.f32.gmra.mxu3 %v1614_v0  ;;  %v84_v0 = vld [vmem:[%s1976_s1 + $0x10] sm:$0xff] }
 0x163   :  { %1239 = vmatmul.f32.gmra.mxu1 %v1592_v60  ;;  %1184 = vmatmul.f32.vlgmr.msra.gmra.mxu0 %v1580_v38 }
 0x164   :  { %v1817_v11 = vadd.f32 %v488_v56, %v438_v28  ;;  %1295 = vperm.xlu1 %1360, %v84_v0  }
 0x165   :  { %v539_v29 = vpop.f32.mrf.mxu2  ;;  %v630_v47 = vpop.f32.mrf.mxu3 }
 0x166   :  { %v627_v46 = vadd.f32 %v626_v43, %v539_v29  ;;  %v88_v43 = vld [vmem:[%s1976_s1 + $0x30] sm:$0xff] }
 0x168   :  { %v752_v36 = vpop.f32.mrf.mxu1  ;;  %v685_v51 = vpop.f32.mrf.mxu0  ;;  %v681_v8 = vadd.f32 %v680_v18, %v627_v46  ;;  %1315 = vperm.xlu0 %1359, %v88_v43  }
 0x16a   :  { %1060 = vmatmul.f32.gmra.mxu2 %v1604_v35  ;;  %v1822_v38 = vadd.f32 %v740_v31, %v681_v8  ;;  %1127 = vmatmul.f32.gmra.mxu3 %v1633_v2  ;;  %v82_v35 = vld [vmem:[%s1976_s1] sm:$0xff] }
 0x16b   :  { %1243 = vmatmul.f32.gmra.mxu1 %v1611_v6  ;;  %1188 = vmatmul.f32.gmra.mxu0 %v1592_v60 }
 0x16c   :  { %1285 = vperm.xlu2 %1358, %v82_v35  }
 0x16d   :  { %v547_v53 = vpop.f32.mrf.mxu2  ;;  %v634_v3 = vpop.f32.mrf.mxu3 }
 0x16e   :  { %v631_v5 = vadd.f32 %v630_v47, %v547_v53 }
 0x170   :  { %v758_v24 = vpop.f32.mrf.mxu1  ;;  %v690_v34 = vpop.f32.mrf.mxu0  ;;  %v686_v37 = vadd.f32 %v685_v51, %v631_v5 }
 0x172   :  { %1065 = vmatmul.f32.gmra.mxu2 %v1624_v22  ;;  %v1831_v60 = vadd.f32 %v746_v63, %v686_v37  ;;  %1133 = vmatmul.f32.gmra.mxu3 %v1653_v16 }
 0x173   :  { %1247 = vmatmul.f32.gmra.mxu1 %v1630_v7  ;;  %1192 = vmatmul.f32.gmra.mxu0 %v1611_v6  ;;  %v86_v6 = vld [vmem:[%s1976_s1 + $0x20] sm:$0xff] }
 0x174   :  { %1305 = vperm.xlu1 %1360, %v86_v6  }
 0x175   :  { %v555_v2 = vpop.f32.mrf.mxu2  ;;  %v638_v40 = vpop.f32.mrf.mxu3 }
 0x176   :  { %v635_v39 = vadd.f32 %v634_v3, %v555_v2 }
 0x178   :  { %v764_v56 = vpop.f32.mrf.mxu1  ;;  %v695_v62 = vpop.f32.mrf.mxu0  ;;  %v691_v58 = vadd.f32 %v690_v34, %v635_v39 }
 0x17a   :  { %1070 = vmatmul.f32.gmra.mxu2 %v1641_v10  ;;  %v1843_v22 = vadd.f32 %v752_v36, %v691_v58  ;;  %1139 = vmatmul.f32.gmra.mxu3 %v1673_v26  ;;  %v89_v10 = vld [vmem:[%s1976_s1 + $0x38] sm:$0xff]  ;;  %v87_v36 = vld [vmem:[%s1976_s1 + $0x28] sm:$0xff] }
 0x17b   :  { %1251 = vmatmul.f32.gmra.mxu1 %v1650_v15  ;;  %1196 = vmatmul.f32.gmra.mxu0 %v1630_v7 }
 0x17c   :  { %1320 = vperm.xlu1 %1360, %v89_v10  }
 0x17d   :  { %v563_v16 = vpop.f32.mrf.mxu2  ;;  %v642_v52 = vpop.f32.mrf.mxu3 }
 0x17e   :  { %v639_v9 = vadd.f32 %v638_v40, %v563_v16 }
 0x180   :  { %v770_v1 = vpop.f32.mrf.mxu1  ;;  %v700_v4 = vpop.f32.mrf.mxu0  ;;  %v696_v31 = vadd.f32 %v695_v62, %v639_v9 }
 0x182   :  { %1075 = vmatmul.f32.gmra.mxu2 %v1662_v20  ;;  %v1852_v7 = vadd.f32 %v758_v24, %v696_v31  ;;  %1145 = vmatmul.f32.gmra.mxu3 %v1694_v41  ;;  %v85_v20 = vld [vmem:[%s1976_s1 + $0x18] sm:$0xff] }
 0x183   :  { %1255 = vmatmul.f32.gmra.mxu1 %v1670_v25  ;;  %1200 = vmatmul.f32.gmra.mxu0 %v1650_v15 }
 0x184   :  { %1300 = vperm.xlu2 %1358, %v85_v20  }
 0x185   :  { %v571_v26 = vpop.f32.mrf.mxu2  ;;  %v646_v14 = vpop.f32.mrf.mxu3 }
 0x186   :  { %v643_v12 = vadd.f32 %v642_v52, %v571_v26 }
 0x188   :  { %v776_v19 = vpop.f32.mrf.mxu1  ;;  %v705_v21 = vpop.f32.mrf.mxu0  ;;  %v701_v17 = vadd.f32 %v700_v4, %v643_v12 }
 0x18a   :  { %1080 = vmatmul.f32.gmra.mxu2 %v1683_v27  ;;  %v765_v15 = vadd.f32 %v764_v56, %v701_v17  ;;  %1151 = vmatmul.f32.gmra.mxu3 %v1718_v54 }
 0x18b   :  { %1259 = vmatmul.f32.gmra.mxu1 %v1691_v32  ;;  %1204 = vmatmul.f32.gmra.mxu0 %v1670_v25 }
 0x18c   :  { %1310 = vperm.xlu2 %1358, %v87_v36  }
 0x18d   :  { %v579_v41 = vpop.f32.mrf.mxu2  ;;  %v650_v18 = vpop.f32.mrf.mxu3 }
 0x18e   :  { %v647_v63 = vadd.f32 %v646_v14, %v579_v41 }
 0x190   :  { %v782_v23 = vpop.f32.mrf.mxu1  ;;  %v710_v28 = vpop.f32.mrf.mxu0  ;;  %v706_v61 = vadd.f32 %v705_v21, %v647_v63 }
 0x192   :  { %1085 = vmatmul.f32.gmra.mxu2 %v1705_v45  ;;  %v771_v13 = vadd.f32 %v770_v1, %v706_v61  ;;  %1157 = vmatmul.f32.gmra.mxu3 %v1736_v44 }
 0x193   :  { %1263 = vmatmul.f32.gmra.mxu1 %v1715_v50  ;;  %1208 = vmatmul.f32.gmra.mxu0 %v1691_v32 }
 0x195   :  { %v587_v25 = vpop.f32.mrf.mxu2  ;;  %v654_v29 = vpop.f32.mrf.mxu3 }
 0x196   :  { %v651_v27 = vadd.f32 %v650_v18, %v587_v25 }
 0x198   :  { %v1002_v54 = vpop.f32.mrf.mxu1  ;;  %v715_v46 = vpop.f32.mrf.mxu0  ;;  %v711_v47 = vadd.f32 %v710_v28, %v651_v27 }
 0x19a   :  { %1090 = vmatmul.f32.gmra.mxu2 %v1726_v59  ;;  %v777_v45 = vadd.f32 %v776_v19, %v711_v47 }
 0x19b   :  { %1212 = vmatmul.f32.gmra.mxu0 %v1715_v50 }
 0x19d   :  { %v595_v32 = vpop.f32.mrf.mxu2  ;;  %v860_v8 = vpop.f32.mrf.mxu3 }
 0x19e   :  { %v655_v51 = vadd.f32 %v654_v29, %v595_v32 }
 0x1a0   :  { %v1006_v44 = vpop.f32.mrf.mxu1  ;;  %v915_v0 = vpop.f32.mrf.mxu0  ;;  %v716_v53 = vadd.f32 %v715_v46, %v655_v51 }
 0x1a1   :  { %v1003_v32 = vadd.f32 %v1002_v54, %v915_v0 }
 0x1a2   :  { %v783_v5 = vadd.f32 %v782_v23, %v716_v53 }
 0x1a5   :  { %v809_v3 = vpop.f32.mrf.mxu2  ;;  %v864_v34 = vpop.f32.mrf.mxu3 }
 0x1a6   :  { %v810_v24 = vadd.f32 %v809_v3, %v1822_v38 }
 0x1a8   :  { %v1875_v37 = vpop.f32.mrf.mxu1  ;;  %v923_v35 = vpop.f32.mrf.mxu0  ;;  %v861_v2 = vadd.f32 %v860_v8, %v810_v24 }
 0x1ad   :  { %v813_v39 = vpop.f32.mrf.mxu2  ;;  %v868_v50 = vpop.f32.mrf.mxu3 }
 0x1ae   :  { %v814_v59 = vadd.f32 %v813_v39, %v1831_v60  ;;  %v1007_v39 = vadd.f32 %v1006_v44, %v923_v35 }
 0x1b0   :  { %v1878_v40 = vpop.f32.mrf.mxu1  ;;  %v931_v56 = vpop.f32.mrf.mxu0  ;;  %v1880_v62 = vadd.f32 %v864_v34, %v814_v59 }
 0x1b5   :  { %v817_v58 = vpop.f32.mrf.mxu2  ;;  %v872_v16 = vpop.f32.mrf.mxu3 }
 0x1b6   :  { %v818_v6 = vadd.f32 %v817_v58, %v1843_v22 }
 0x1b8   :  { %v1883_v9 = vpop.f32.mrf.mxu1  ;;  %v1885_v38 = vpop.f32.mrf.mxu0  ;;  %v1887_v52 = vadd.f32 %v868_v50, %v818_v6 }
 0x1bd   :  { %v821_v1 = vpop.f32.mrf.mxu2  ;;  %v876_v60 = vpop.f32.mrf.mxu3 }
 0x1be   :  { %v822_v4 = vadd.f32 %v821_v1, %v1852_v7 }
 0x1c0   :  { %v1890_v31 = vpop.f32.mrf.mxu0  ;;  %v1892_v10 = vpop.f32.mrf.mxu1  ;;  %v1894_v26 = vadd.f32 %v872_v16, %v822_v4 }
 0x1c5   :  { %v825_v12 = vpop.f32.mrf.mxu2  ;;  %v880_v22 = vpop.f32.mrf.mxu3 }
 0x1c6   :  { %v826_v14 = vadd.f32 %v825_v12, %v765_v15  ;;  %v1286_v58 = vpop.permute.xlu2 %1285 }
 0x1c8   :  { %v1896_v19 = vpop.f32.mrf.mxu0  ;;  %v1898_v21 = vadd.f32 %v876_v60, %v826_v14  ;;  %v1900_v17 = vpop.f32.mrf.mxu1  ;;  %v1275_v60 = vmul.f32 0.25, %v1766_v48 }
 0x1cd   :  { %v829_v43 = vpop.f32.mrf.mxu2  ;;  %v884_v41 = vpop.f32.mrf.mxu3 }
 0x1ce   :  { %v830_v20 = vadd.f32 %v829_v43, %v771_v13 }
 0x1d0   :  { %v1902_v7 = vpop.f32.mrf.mxu0  ;;  %v1904_v63 = vadd.f32 %v880_v22, %v830_v20  ;;  %v1906_v18 = vpop.f32.mrf.mxu1  ;;  %v1011_v22 = vadd.f32 %v1875_v37, %v931_v56  ;;  %v1015_v56 = vadd.f32 %v1878_v40, %v1885_v38  ;;  %v1019_v40 = vadd.f32 %v1883_v9, %v1890_v31 }
 0x1d1   :  { %v1023_v9 = vadd.f32 %v1892_v10, %v1896_v19  ;;  %v1027_v10 = vadd.f32 %v1900_v17, %v1902_v7 }
 0x1d2   :  { %v1291_v43 = vpop.permute.xlu0 %1290 }
 0x1d5   :  { %v833_v23 = vpop.f32.mrf.mxu2  ;;  %v888_v61 = vpop.f32.mrf.mxu3 }
 0x1d6   :  { %v834_v28 = vadd.f32 %v833_v23, %v777_v45  ;;  %v1276_v23 = vmul.f32 0.25, %v1773_v30 }
 0x1d8   :  { %v1908_v15 = vpop.f32.mrf.mxu0  ;;  %v1910_v25 = vadd.f32 %v884_v41, %v834_v28  ;;  %v1236_v27 = vpop.f32.mrf.mxu1 }
 0x1d9   :  { %v1031_v7 = vadd.f32 %v1906_v18, %v1908_v15 }
 0x1dd   :  { %v837_v29 = vpop.f32.mrf.mxu2  ;;  %v1116_v47 = vpop.f32.mrf.mxu3 }
 0x1de   :  { %v838_v46 = vadd.f32 %v837_v29, %v783_v5  ;;  %v1301_v38 = vpop.permute.xlu2 %1300 }
 0x1e0   :  { %v1185_v36 = vpop.f32.mrf.mxu0  ;;  %v1912_v13 = vadd.f32 %v888_v61, %v838_v46  ;;  %v1240_v3 = vpop.f32.mrf.mxu1 }
 0x1e5   :  { %v1056_v51 = vpop.f32.mrf.mxu2  ;;  %v1122_v53 = vpop.f32.mrf.mxu3 }
 0x1e6   :  { %v1057_v8 = vadd.f32 %v1056_v51, %v1003_v32  ;;  %v1277_v51 = vmul.f32 0.25, %v1780_v49  ;;  %v1311_v19 = vpop.permute.xlu2 %1310 }
 0x1e8   :  { %v1189_v24 = vpop.f32.mrf.mxu0  ;;  %v1117_v34 = vadd.f32 %v1116_v47, %v1057_v8  ;;  %v1244_v54 = vpop.f32.mrf.mxu1 }
 0x1ea   :  { %v1186_v45 = vadd.f32 %v1185_v36, %v1117_v34 }
 0x1ec   :  { %v1237_v59 = vadd.f32 %v1236_v27, %v1186_v45 }
 0x1ed   :  { %v1061_v50 = vpop.f32.mrf.mxu2  ;;  %v1128_v16 = vpop.f32.mrf.mxu3 }
 0x1ee   :  { %v1062_v6 = vadd.f32 %v1061_v50, %v1007_v39  ;;  %v1267_v1 = vmax.f32 %v861_v2, %v1237_v59 }
 0x1f0   :  { %v1193_v5 = vpop.f32.mrf.mxu0  ;;  %v1123_v4 = vadd.f32 %v1122_v53, %v1062_v6  ;;  %v1323_v12 = vmul.f32 %v1286_v58, %v1267_v1  ;;  %v1248_v37 = vpop.f32.mrf.mxu1  ;;  %v1278_v58 = vmul.f32 0.25, %v1786_v33 }
 0x1f2   :  { %v1190_v0 = vadd.f32 %v1189_v24, %v1123_v4  ;;  %v1331_v14 = vadd.f32 %v1323_v12, %v1275_v60 }
 0x1f4   :  { %1340 = vst.msk [vmem:[%s1977_s5] sm:$0xff] %vm1339_vm1, %v1331_v14  ;;  %v1241_v44 = vadd.f32 %v1240_v3, %v1190_v0  ;;  %v1279_v14 = vmul.f32 0.25, %v1793_v42 }
 0x1f5   :  { %v1066_v35 = vpop.f32.mrf.mxu2  ;;  %v1134_v41 = vpop.f32.mrf.mxu3 }
 0x1f6   :  { %v1067_v2 = vadd.f32 %v1066_v35, %v1011_v22  ;;  %v1268_v20 = vmax.f32 %v1880_v62, %v1241_v44  ;;  %v1296_v62 = vpop.permute.xlu1 %1295 }
 0x1f8   :  { %v1129_v48 = vadd.f32 %v1128_v16, %v1067_v2  ;;  %v1324_v28 = vmul.f32 %v1291_v43, %v1268_v20  ;;  %v1197_v61 = vpop.f32.mrf.mxu0  ;;  %v1252_v39 = vpop.f32.mrf.mxu1 }
 0x1fa   :  { %v1194_v27 = vadd.f32 %v1193_v5, %v1129_v48  ;;  %v1332_v29 = vadd.f32 %v1324_v28, %v1276_v23  ;;  %v1280_v23 = vmul.f32 0.25, %v1800_v55 }
 0x1fc   :  { %1341 = vst.msk [vmem:[%s1977_s5 + $0x8] sm:$0xff] %vm1339_vm1, %v1332_v29  ;;  %v1245_v46 = vadd.f32 %v1244_v54, %v1194_v27 }
 0x1fd   :  { %v1071_v47 = vpop.f32.mrf.mxu2  ;;  %v1140_v53 = vpop.f32.mrf.mxu3 }
 0x1fe   :  { %v1072_v36 = vadd.f32 %v1071_v47, %v1015_v56  ;;  %v1269_v32 = vmax.f32 %v1887_v52, %v1245_v46  ;;  %v1306_v4 = vpop.permute.xlu1 %1305  ;;  %v1316_v56 = vpop.permute.xlu0 %1315 }
 0x200   :  { %v1135_v30 = vadd.f32 %v1134_v41, %v1072_v36  ;;  %v1325_v8 = vmul.f32 %v1296_v62, %v1269_v32  ;;  %v1201_v34 = vpop.f32.mrf.mxu0  ;;  %v1256_v33 = vpop.f32.mrf.mxu1  ;;  %v1281_v62 = vmul.f32 0.25, %v1807_v57 }
 0x202   :  { %v1198_v3 = vadd.f32 %v1197_v61, %v1135_v30  ;;  %v1333_v24 = vadd.f32 %v1325_v8, %v1277_v51 }
 0x204   :  { %1342 = vst.msk [vmem:[%s1977_s5 + $0x10] sm:$0xff] %vm1339_vm1, %v1333_v24  ;;  %v1249_v45 = vadd.f32 %v1248_v37, %v1198_v3 }
 0x205   :  { %v1076_v52 = vpop.f32.mrf.mxu2  ;;  %v1146_v5 = vpop.f32.mrf.mxu3 }
 0x206   :  { %v1077_v59 = vadd.f32 %v1076_v52, %v1019_v40  ;;  %v1270_v49 = vmax.f32 %v1894_v26, %v1249_v45 }
 0x208   :  { %v1141_v50 = vadd.f32 %v1140_v53, %v1077_v59  ;;  %v1326_v6 = vmul.f32 %v1301_v38, %v1270_v49  ;;  %v1205_v60 = vpop.f32.mrf.mxu0  ;;  %v1260_v61 = vpop.f32.mrf.mxu1 }
 0x209   :  { %v1321_v53 = vpop.permute.xlu1 %1320 }
 0x20a   :  { %v1202_v16 = vadd.f32 %v1201_v34, %v1141_v50  ;;  %v1334_v1 = vadd.f32 %v1326_v6, %v1278_v58 }
 0x20c   :  { %1343 = vst.msk [vmem:[%s1977_s5 + $0x18] sm:$0xff] %vm1339_vm1, %v1334_v1  ;;  %v1253_v31 = vadd.f32 %v1252_v39, %v1202_v16 }
 0x20d   :  { %v1081_v12 = vpop.f32.mrf.mxu2  ;;  %v1152_v2 = vpop.f32.mrf.mxu3 }
 0x20e   :  { %v1082_v26 = vadd.f32 %v1081_v12, %v1023_v9  ;;  %v1271_v54 = vmax.f32 %v1898_v21, %v1253_v31 }
 0x210   :  { %v1147_v0 = vadd.f32 %v1146_v5, %v1082_v26  ;;  %v1327_v22 = vmul.f32 %v1306_v4, %v1271_v54  ;;  %v1209_v48 = vpop.f32.mrf.mxu0  ;;  %v1264_v18 = vpop.f32.mrf.mxu1 }
 0x212   :  { %v1206_v44 = vadd.f32 %v1205_v60, %v1147_v0  ;;  %v1335_v35 = vadd.f32 %v1327_v22, %v1279_v14 }
 0x214   :  { %1344 = vst.msk [vmem:[%s1977_s5 + $0x20] sm:$0xff] %vm1339_vm1, %v1335_v35  ;;  %v1257_v43 = vadd.f32 %v1256_v33, %v1206_v44 }
 0x215   :  { %v1086_v20 = vpop.f32.mrf.mxu2  ;;  %v1158_v47 = vpop.f32.mrf.mxu3 }
 0x216   :  { %v1087_v21 = vadd.f32 %v1086_v20, %v1027_v10  ;;  %v1272_v41 = vmax.f32 %v1904_v63, %v1257_v43 }
 0x218   :  { %v1153_v42 = vadd.f32 %v1152_v2, %v1087_v21  ;;  %v1328_v28 = vmul.f32 %v1311_v19, %v1272_v41  ;;  %v1213_v32 = vpop.f32.mrf.mxu0 }
 0x21a   :  { %v1210_v27 = vadd.f32 %v1209_v48, %v1153_v42  ;;  %v1336_v17 = vadd.f32 %v1328_v28, %v1280_v23 }
 0x21c   :  { %1345 = vst.msk [vmem:[%s1977_s5 + $0x28] sm:$0xff] %vm1339_vm1, %v1336_v17  ;;  %v1261_v29 = vadd.f32 %v1260_v61, %v1210_v27 }
 0x21d   :  { %v1091_v37 = vpop.f32.mrf.mxu2 }
 0x21e   :  { %v1092_v63 = vadd.f32 %v1091_v37, %v1031_v7  ;;  %v1273_v46 = vmax.f32 %v1910_v25, %v1261_v29  ;;  %v1282_v25 = vmul.f32 0.25, %v1817_v11 }
 0x220   :  { %v1159_v55 = vadd.f32 %v1158_v47, %v1092_v63  ;;  %v1329_v36 = vmul.f32 %v1316_v56, %v1273_v46 }
 0x222   :  { %v1214_v30 = vadd.f32 %v1213_v32, %v1159_v55  ;;  %v1337_v51 = vadd.f32 %v1329_v36, %v1281_v62 }
 0x224   :  { %v1265_v15 = vadd.f32 %v1264_v18, %v1214_v30  ;;  %1346 = vst.msk [vmem:[%s1977_s5 + $0x30] sm:$0xff] %vm1339_vm1, %v1337_v51 }
 0x226   :  { %v1274_v8 = vmax.f32 %v1912_v13, %v1265_v15 }
 0x228   :  { %v1330_v3 = vmul.f32 %v1321_v53, %v1274_v8 }
 0x22a   :  { %v1338_v24 = vadd.f32 %v1330_v3, %v1282_v25 }
 0x22c   :  { %1347 = vst.msk [vmem:[%s1977_s5 + $0x38] sm:$0xff] %vm1339_vm1, %v1338_v24 }

</bundles_post_ra>
